<compile_context>
chip_gen: v7x
topology: tpu7x:2x2x1
jax: 0.10.0
libtpu: 0.0.40
codegen_flags: <defaults>
</compile_context>

<pallas_src>
import functools

import jax
import jax.numpy as jnp
from jax.experimental import pallas as pl
from jax.experimental.pallas import tpu as pltpu


# ------------------------------------------------------------------
# Pallas kernel: masked linear  y = x @ (W * mask)^T + b
# ------------------------------------------------------------------
def _masked_linear_kernel(x_ref, w_ref, mask_ref, b_ref, o_ref, acc_ref):
    k = pl.program_id(2)

    @pl.when(k == 0)
    def _():
        acc_ref[...] = jnp.zeros_like(acc_ref)

    # 2:4 mask applied as a select on the bf16 weight tile: lossless for an
    # exact 0/1 mask, no bf16 multiply (VPU-safe on v5e), no extra casts.
    w = w_ref[...]                                                  # (tn, tk) bf16
    masked_w = jnp.where(mask_ref[...] != 0, w, jnp.zeros_like(w))  # (tn, tk) bf16

    # Contract the last dims of both operands directly on the (N, K) weight
    # layout — no `.T` on the tile before the MXU.
    acc_ref[...] += jax.lax.dot_general(
        x_ref[...],                                                 # (tm, tk) bf16
        masked_w,                                                   # (tn, tk) bf16
        dimension_numbers=(((1,), (1,)), ((), ())),
        preferred_element_type=jnp.float32)                         # (tm, tn) f32

    @pl.when(k == pl.num_programs(2) - 1)
    def _():
        o_ref[...] = (acc_ref[...] + b_ref[...]).astype(o_ref.dtype)


def _round_up(x, m):
    return (x + m - 1) // m * m


@functools.partial(jax.jit, static_argnames=("tm", "tn", "tk"))
def masked_linear(x, weight, mask, bias, *, tm=1024, tn=512, tk=1024):
    """x:(M,K) f32, weight:(N,K) f32, mask:(N,K) int8 {0,1}, bias:(1,N) f32 -> (M,N) f32."""
    M, K = x.shape
    N = weight.shape[0]
    out_dtype = x.dtype

    # Adapt tile sizes to small problems while keeping TPU tile alignment
    # (bf16 sublane packing -> tm multiple of 16; lane-dense output -> tn
    # multiple of 128; tk multiple of 128).
    tm = min(tm, _round_up(M, 16))
    tn = min(tn, _round_up(N, 128))
    tk = min(tk, _round_up(K, 128))

    Mp, Np, Kp = _round_up(M, tm), _round_up(N, tn), _round_up(K, tk)

    # Fold the dtype cast into the padding pass (single XLA fusion over each
    # operand). Zero padding is exact: padded weight/mask rows & cols are 0,
    # padded bias is 0, padded x columns multiply zero weight columns.
    xb = x.astype(jnp.bfloat16)
    wb = weight.astype(jnp.bfloat16)
    xp = jnp.pad(xb, ((0, Mp - M), (0, Kp - K))) if (Mp, Kp) != (M, K) else xb
    wp = jnp.pad(wb, ((0, Np - N), (0, Kp - K))) if (Np, Kp) != (N, K) else wb
    mp = (jnp.pad(mask, ((0, Np - N), (0, Kp - K)))
          if (Np, Kp) != (N, K) else mask)
    bp = jnp.pad(bias, ((0, 0), (0, Np - N))) if Np != N else bias

    grid = (Mp // tm, Np // tn, Kp // tk)

    # HBM traffic with re-read factors: x is re-read once per output-column
    # tile (Np/tn), weight+mask once per output-row tile (Mp/tm).
    bytes_accessed = (Mp * Kp * 2 * (Np // tn)            # x  (bf16)
                      + Np * Kp * 2 * (Mp // tm)          # W  (bf16)
                      + Np * Kp * 1 * (Mp // tm)          # mask (int8)
                      + Np * 4                            # bias
                      + Mp * Np * 4)                      # output (f32)

    # Double-buffered inputs + double-buffered output + f32 accumulator.
    vmem_bytes = (2 * (tm * tk * 2) + 2 * (tn * tk * 2) + 2 * (tn * tk * 1)
                  + 2 * (tn * 4) + 2 * (tm * tn * 4) + tm * tn * 4)
    vmem_limit = min(48 << 20, max(2 * vmem_bytes, 16 << 20))

    out = pl.pallas_call(
        _masked_linear_kernel,
        out_shape=jax.ShapeDtypeStruct((Mp, Np), out_dtype),
        grid_spec=pltpu.PrefetchScalarGridSpec(
            num_scalar_prefetch=0,
            grid=grid,
            in_specs=[
                pl.BlockSpec((tm, tk), lambda i, j, k: (i, k)),   # x     (bf16)
                pl.BlockSpec((tn, tk), lambda i, j, k: (j, k)),   # W     (bf16)
                pl.BlockSpec((tn, tk), lambda i, j, k: (j, k)),   # mask  (int8)
                pl.BlockSpec((1, tn), lambda i, j, k: (0, j)),    # bias  (f32)
            ],
            out_specs=pl.BlockSpec((tm, tn), lambda i, j, k: (i, j)),
            scratch_shapes=[pltpu.VMEM((tm, tn), jnp.float32)],
        ),
        compiler_params=pltpu.CompilerParams(
            dimension_semantics=("parallel", "parallel", "arbitrary"),
            vmem_limit_bytes=vmem_limit),
        cost_estimate=pl.CostEstimate(
            flops=2 * Mp * Np * Kp,
            transcendentals=0,
            bytes_accessed=bytes_accessed),
    )(xp, wp, mp, bp)

    return out[:M, :N]


# ------------------------------------------------------------------
# Gumbel-softmax (hard) + 2:4 mask construction — preprocessing glue.
# Matches torch semantics: gumbels = -log(Exp(1)); hard one-hot forward
# value. (Forward value of `y_hard - y_soft.detach() + y_soft` is exactly
# y_hard, so the kernel mask is built from the hard one-hot and stored as
# int8 {0,1} — exact and 1 B/elem on the HBM stream.)
# ------------------------------------------------------------------
MASKING_PATTERNS = jnp.array(
    [[0.0, 0.0, 1.0, 1.0],
     [0.0, 1.0, 0.0, 1.0],
     [0.0, 1.0, 1.0, 0.0],
     [1.0, 0.0, 0.0, 1.0],
     [1.0, 0.0, 1.0, 0.0],
     [1.1 - 0.1, 1.0, 0.0, 0.0]], dtype=jnp.float32).round()


def gumbel_hard_mask(key, choice_weights, out_features, in_features, tau=1.0):
    # gumbels = -log(Exp(1))  (standard Gumbel(0,1) noise); clamp away from 0.
    expo = jax.random.exponential(key, choice_weights.shape, dtype=jnp.float32)
    expo = jnp.maximum(expo, jnp.finfo(jnp.float32).tiny)
    gumbels = -jnp.log(expo)
    logits = (choice_weights + gumbels) / tau
    y_soft = jax.nn.softmax(logits, axis=-1)                        # (n_4blocks, 6)
    # NaN-safe entropy: xlogy(0, 0) == 0.
    entropy = -jax.scipy.special.xlogy(y_soft, y_soft).sum(axis=-1)
    # hard=True forward value == one-hot of argmax; gather the 2:4 pattern.
    idx = jnp.argmax(y_soft, axis=-1)                               # (n_4blocks,)
    mask = jnp.take(MASKING_PATTERNS, idx, axis=0)                  # (n_4blocks, 4)
    mask = mask.reshape(out_features, in_features)                  # (N, K)
    # TODO(synk): expose the float straight-through mask for a training VJP.
    return mask.astype(jnp.int8), entropy


# ------------------------------------------------------------------
# Module-equivalent forward wrapper
# ------------------------------------------------------------------
def gumbel24_linear_forward(x, weight, bias, choice_weights, key):
    out_features, in_features = weight.shape
    mask, entropy = gumbel_hard_mask(key, choice_weights,
                                     out_features, in_features)
    out = masked_linear(x, weight, mask, bias.reshape(1, -1))
    return out, entropy, mask


if __name__ == "__main__":
    # --- Test 1: small shapes consistent with the module -------------------
    batch, in_features, out_features = 8, 32, 16
    n_4blocks = in_features * out_features // 4

    key = jax.random.PRNGKey(0)
    k_x, k_w, k_b, k_g, k_x2, k_w2, k_b2, k_m2 = jax.random.split(key, 8)

    limit = (6.0 / (in_features + out_features)) ** 0.5
    weight = jax.random.uniform(k_w, (out_features, in_features),
                                minval=-limit, maxval=limit, dtype=jnp.float32)
    bias = 1e-6 * jax.random.normal(k_b, (out_features,), dtype=jnp.float32)
    choice_weights = jnp.ones((n_4blocks, 6), dtype=jnp.float32)
    x = jax.random.normal(k_x, (batch, in_features), dtype=jnp.float32)

    out, entropy, mask = gumbel24_linear_forward(x, weight, bias,
                                                 choice_weights, k_g)
    out = jax.block_until_ready(out)

    assert out.shape == (batch, out_features)
    assert entropy.shape == (n_4blocks,)
    assert bool(jnp.all(jnp.isfinite(out)))
    assert bool(jnp.all(jnp.isfinite(entropy)))

    # Reference 1: same bf16-MXU precision as the kernel (tight tolerance).
    masked_w = weight * mask.astype(jnp.float32)
    ref_bf16 = (jnp.dot(x.astype(jnp.bfloat16),
                        masked_w.astype(jnp.bfloat16).T,
                        preferred_element_type=jnp.float32)
                + bias[None, :])
    assert jnp.allclose(out, ref_bf16, atol=1e-3, rtol=1e-3)

    # Reference 2: full f32 math (loose tolerance for bf16 input rounding).
    ref_f32 = x @ masked_w.T + bias[None, :]
    assert jnp.allclose(out, ref_f32, atol=3e-2, rtol=3e-2)

    # Every 4-block of the mask keeps exactly 2 of 4 weights (2:4 sparsity).
    assert jnp.all(mask.astype(jnp.int32).reshape(-1, 4).sum(-1) == 2)

    # --- Test 2: multi-tile grid (exercises K accumulation + pl.when) ------
    M2, K2, N2 = 192, 384, 256
    x2 = jax.random.normal(k_x2, (M2, K2), dtype=jnp.float32)
    w2 = jax.random.normal(k_w2, (N2, K2), dtype=jnp.float32) * 0.05
    b2 = jax.random.normal(k_b2, (N2,), dtype=jnp.float32)
    m2 = jax.random.bernoulli(k_m2, 0.5, (N2, K2)).astype(jnp.int8)

    out2 = masked_linear(x2, w2, m2, b2.reshape(1, -1), tm=64, tn=128, tk=128)
    out2 = jax.block_until_ready(out2)
    ref2 = (jnp.dot(x2.astype(jnp.bfloat16),
                    (w2 * m2.astype(jnp.float32)).astype(jnp.bfloat16).T,
                    preferred_element_type=jnp.float32)
            + b2[None, :])
    assert out2.shape == (M2, N2)
    assert jnp.allclose(out2, ref2, atol=2e-2, rtol=2e-2)

    print("KERNEL_OK")
</pallas_src>

<mosaic_0001>
module attributes {stable_mosaic.version = 11 : i64} {
  func.func @_masked_linear_kernel(%arg0: i32, %arg1: i32, %arg2: i32, %arg3: memref<16x128xbf16, #tpu.memory_space<vmem>>, %arg4: memref<128x128xbf16, #tpu.memory_space<vmem>>, %arg5: memref<128x128xi8, #tpu.memory_space<vmem>>, %arg6: memref<1x128xf32, #tpu.memory_space<vmem>>, %arg7: memref<16x128xf32, #tpu.memory_space<vmem>>, %arg8: memref<16x128xf32, #tpu.memory_space<vmem>>) attributes {dimension_semantics = [#tpu.dimension_semantics<parallel>, #tpu.dimension_semantics<parallel>, #tpu.dimension_semantics<arbitrary>], iteration_bounds = array<i64: 1, 1, 1>, scalar_prefetch = 0 : i64, scratch_operands = 1 : i64, tpu.core_type = #tpu.core_type<tc>, window_params = [{transform_indices = @transform_0, window_bounds = array<i64: 16, 128>}, {transform_indices = @transform_1, window_bounds = array<i64: 128, 128>}, {transform_indices = @transform_2, window_bounds = array<i64: 128, 128>}, {transform_indices = @transform_3, window_bounds = array<i64: 1, 128>}, {transform_indices = @transform_4, window_bounds = array<i64: 16, 128>}]} {
    %c0_i32 = arith.constant 0 : i32
    %0 = arith.cmpi eq, %arg2, %c0_i32 : i32
    %1 = arith.extui %0 : i1 to i32
    %c0_i32_0 = arith.constant 0 : i32
    %2 = arith.cmpi ne, %1, %c0_i32_0 : i32
    scf.if %2 {
      %cst_13 = arith.constant 0.000000e+00 : f32
      %17 = vector.broadcast %cst_13 : f32 to vector<16x128xf32>
      %c0_14 = arith.constant 0 : index
      %c0_15 = arith.constant 0 : index
      %18 = vector.load %arg8[%c0_14, %c0_15] : memref<16x128xf32, #tpu.memory_space<vmem>>, vector<16x128xf32>
      tpu.vector_store %arg8[%c0_14, %c0_15], %17 {strides = array<i32>} : memref<16x128xf32, #tpu.memory_space<vmem>>, vector<16x128xf32>,
    } else {
    }
    %c0 = arith.constant 0 : index
    %c0_1 = arith.constant 0 : index
    %3 = vector.load %arg4[%c0, %c0_1] : memref<128x128xbf16, #tpu.memory_space<vmem>>, vector<128x128xbf16>
    %c0_2 = arith.constant 0 : index
    %c0_3 = arith.constant 0 : index
    %4 = vector.load %arg5[%c0_2, %c0_3] : memref<128x128xi8, #tpu.memory_space<vmem>>, vector<128x128xi8>
    %c0_i8 = arith.constant 0 : i8
    %5 = vector.broadcast %c0_i8 : i8 to vector<128x128xi8>
    %6 = arith.cmpi ne, %4, %5 : vector<128x128xi8>
    %cst = arith.constant 0.000000e+00 : bf16
    %7 = vector.broadcast %cst : bf16 to vector<128x128xbf16>
    %8 = arith.select %6, %3, %7 : vector<128x128xi1>, vector<128x128xbf16>
    %c0_4 = arith.constant 0 : index
    %c0_5 = arith.constant 0 : index
    %9 = vector.load %arg8[%c0_4, %c0_5] : memref<16x128xf32, #tpu.memory_space<vmem>>, vector<16x128xf32>
    %c0_6 = arith.constant 0 : index
    %c0_7 = arith.constant 0 : index
    %10 = vector.load %arg3[%c0_6, %c0_7] : memref<16x128xbf16, #tpu.memory_space<vmem>>, vector<16x128xbf16>
    %cst_8 = arith.constant dense<0.000000e+00> : vector<16x128xf32>
    %11 = tpu.matmul %10, %8, %cst_8 {dimension_numbers = #tpu.dot_dimension_numbers<[1], [1], [0], [0], [0, 0, 1, 0], [], []>} : vector<16x128xbf16>, vector<128x128xbf16>, vector<16x128xf32> -> vector<16x128xf32>
    %12 = arith.addf %9, %11 : vector<16x128xf32>
    %c0_9 = arith.constant 0 : index
    %c0_10 = arith.constant 0 : index
    %13 = vector.load %arg8[%c0_9, %c0_10] : memref<16x128xf32, #tpu.memory_space<vmem>>, vector<16x128xf32>
    tpu.vector_store %arg8[%c0_9, %c0_10], %12 {strides = array<i32>} : memref<16x128xf32, #tpu.memory_space<vmem>>, vector<16x128xf32>,
    %c0_i32_11 = arith.constant 0 : i32
    %14 = arith.cmpi eq, %arg2, %c0_i32_11 : i32
    %15 = arith.extui %14 : i1 to i32
    %c0_i32_12 = arith.constant 0 : i32
    %16 = arith.cmpi ne, %15, %c0_i32_12 : i32
    scf.if %16 {
      %c0_13 = arith.constant 0 : index
      %c0_14 = arith.constant 0 : index
      %17 = vector.load %arg8[%c0_13, %c0_14] : memref<16x128xf32, #tpu.memory_space<vmem>>, vector<16x128xf32>
      %c0_15 = arith.constant 0 : index
      %c0_16 = arith.constant 0 : index
      %18 = vector.load %arg6[%c0_15, %c0_16] : memref<1x128xf32, #tpu.memory_space<vmem>>, vector<1x128xf32>
      %19 = vector.broadcast %18 : vector<1x128xf32> to vector<16x128xf32>
      %20 = arith.addf %17, %19 : vector<16x128xf32>
      %c0_17 = arith.constant 0 : index
      %c0_18 = arith.constant 0 : index
      %21 = vector.load %arg7[%c0_17, %c0_18] : memref<16x128xf32, #tpu.memory_space<vmem>>, vector<16x128xf32>
      tpu.vector_store %arg7[%c0_17, %c0_18], %20 {strides = array<i32>} : memref<16x128xf32, #tpu.memory_space<vmem>>, vector<16x128xf32>,
    } else {
    }
    return
  }
  func.func @transform_0(%arg0: i32, %arg1: i32, %arg2: i32) -> (i32, i32) {
    %c0_i32 = arith.constant 0 : i32
    return %arg0, %arg2 : i32, i32
  }
  func.func @transform_1(%arg0: i32, %arg1: i32, %arg2: i32) -> (i32, i32) {
    %c0_i32 = arith.constant 0 : i32
    return %arg1, %arg2 : i32, i32
  }
  func.func @transform_2(%arg0: i32, %arg1: i32, %arg2: i32) -> (i32, i32) {
    %c0_i32 = arith.constant 0 : i32
    return %arg1, %arg2 : i32, i32
  }
  func.func @transform_3(%arg0: i32, %arg1: i32, %arg2: i32) -> (i32, i32) {
    %c0_i32 = arith.constant 0 : i32
    %c0_i32_0 = arith.constant 0 : i32
    return %c0_i32, %arg1 : i32, i32
  }
  func.func @transform_4(%arg0: i32, %arg1: i32, %arg2: i32) -> (i32, i32) {
    %c0_i32 = arith.constant 0 : i32
    return %arg0, %arg1 : i32, i32
  }
}

</mosaic_0001>

<bundles_post_ra>
// kernel: masked_linear.1
= control target key start
LH: loop header
LB: loop body
LE: loop exit
PB: predicated region body
PF: predicated region fallthrough
CT: control target
= control target key end

     0   :  { %v381_v0 = vmov 0.0   ;;  %vm382_vm0 = vmmov 0   ;;  %v383_v2 = vmov 0   ;;  %s517_s2 = inlined_call_operand.vmem [shape: s8[128,128], index: 2, kind: input, shape index: {}]   ;;  %s518_s0 = inlined_call_operand.vmem [shape: bf16[16,128], index: 0, kind: input, shape index: {}]   ;;  %s519_s1 = inlined_call_operand.vmem [shape: bf16[128,128], index: 1, kind: input, shape index: {}]   ;;  %s520_s3 = inlined_call_operand.vmem [shape: f32[1,128], index: 3, kind: input, shape index: {}]   ;;  %s521_s4 = inlined_call_operand.vmem [shape: f32[16,128], index: 4, kind: output, shape index: {}]  }
   0x1   :  { %357 = vmatprep.subr.bf16.mxu0 %v381_v0  ;;  %v43_v1 = vld [vmem:[%s517_s2] sm:$0xff]  ;;  %373 = vmatprep.mubr.msk.bf16.mxu0 %vm382_vm0, %v381_v0  ;;  %v44_v4 = vld [vmem:[%s517_s2 + $0x8] sm:$0xff]  ;;  %v45_v5 = vld [vmem:[%s517_s2 + $0x10] sm:$0xff] }
   0x2   :  { %vm47_vm1 = vnez %v43_v1  ;;  %vm48_vm2 = vnez %v44_v4  ;;  %vm49_vm3 = vnez %v45_v5  ;;  %v27_v36 = vld [vmem:[%s519_s1] sm:$0xf]  ;;  %v28_v37 = vld [vmem:[%s519_s1 + $0x4] sm:$0xf]  ;;  %v29_v45 = vld [vmem:[%s519_s1 + $0x8] sm:$0xf] }
   0x3   :  { %v51_v3 = vsel %vm47_vm1, 16843009, %v383_v2  ;;  %v52_v14 = vsel %vm48_vm2, 16843009, %v383_v2  ;;  %v423_v15 = vsel %vm49_vm3, 16843009, %v383_v2 }
   0x4   :  { %v55_v6 = vunpack.c.0.s8 %v51_v3  ;;  %v56_v7 = vunpack.c.1.s8 %v51_v3  ;;  %v57_v8 = vunpack.c.2.s8 %v51_v3  ;;  %v58_v9 = vunpack.c.3.s8 %v51_v3  ;;  %v30_v50 = vld [vmem:[%s519_s1 + $0xc] sm:$0xf] }
   0x5   :  { %v59_v20 = vunpack.c.0.s8 %v52_v14  ;;  %v60_v21 = vunpack.c.1.s8 %v52_v14  ;;  %v61_v22 = vunpack.c.2.s8 %v52_v14  ;;  %v62_v23 = vunpack.c.3.s8 %v52_v14  ;;  %v46_v14 = vld [vmem:[%s517_s2 + $0x18] sm:$0xff] }
   0x6   :  { %v71_v10 = vpack.c.b16 %v55_v6, %v55_v6  ;;  %v73_v11 = vpack.c.b16 %v56_v7, %v56_v7  ;;  %v75_v12 = vpack.c.b16 %v57_v8, %v57_v8  ;;  %v77_v13 = vpack.c.b16 %v58_v9, %v58_v9 }
   0x7   :  { %v79_v27 = vpack.c.b16 %v59_v20, %v59_v20  ;;  %v81_v43 = vpack.c.b16 %v60_v21, %v60_v21  ;;  %v83_v44 = vpack.c.b16 %v61_v22, %v61_v22  ;;  %v85_v59 = vpack.c.b16 %v62_v23, %v62_v23 }
   0x8   :  { %v72_v16 = vpack.c.b8 %v71_v10, %v71_v10  ;;  %v74_v17 = vpack.c.b8 %v73_v11, %v73_v11  ;;  %v76_v18 = vpack.c.b8 %v75_v12, %v75_v12  ;;  %v78_v19 = vpack.c.b8 %v77_v13, %v77_v13 }
   0x9   :  { %v80_v35 = vpack.c.b8 %v79_v27, %v79_v27  ;;  %v82_v51 = vpack.c.b8 %v81_v43, %v81_v43  ;;  %v84_v56 = vpack.c.b8 %v83_v44, %v83_v44  ;;  %v63_v60 = vunpack.c.0.s8 %v423_v15 }
   0xa   :  { %vm103_vm4 = vnez %v72_v16  ;;  %vm104_vm5 = vnez %v74_v17  ;;  %vm105_vm6 = vnez %v76_v18  ;;  %vm106_vm7 = vnez %v78_v19  ;;  %v31_v16 = vld [vmem:[%s519_s1 + $0x10] sm:$0xf]  ;;  %v32_v17 = vld [vmem:[%s519_s1 + $0x14] sm:$0xf] }
   0xb   :  { %v119_v24 = vsel %vm103_vm4, 16843009, %v383_v2  ;;  %v120_v25 = vsel %vm104_vm5, 16843009, %v383_v2  ;;  %v121_v26 = vsel %vm105_vm6, 16843009, %v383_v2  ;;  %vm107_vm8 = vnez %v80_v35 }
   0xc   :  { %v135_v28 = vunpack.c.1.s8 %v119_v24  ;;  %v136_v29 = vunpack.c.0.s8 %v119_v24  ;;  %v138_v30 = vunpack.c.1.s8 %v120_v25  ;;  %v139_v31 = vunpack.c.0.s8 %v120_v25 }
   0xd   :  { %v122_v32 = vsel %vm106_vm7, 16843009, %v383_v2  ;;  %v141_v33 = vunpack.c.1.s8 %v121_v26  ;;  %v142_v34 = vunpack.c.0.s8 %v121_v26  ;;  %v123_v47 = vsel %vm107_vm8, 16843009, %v383_v2 }
   0xe   :  { %v137_v38 = vpack.c.b16 %v135_v28, %v136_v29  ;;  %v140_v39 = vpack.c.b16 %v138_v30, %v139_v31  ;;  %v144_v40 = vunpack.c.1.s8 %v122_v32  ;;  %v145_v41 = vunpack.c.0.s8 %v122_v32 }
   0xf   :  { %v143_v42 = vpack.c.b16 %v141_v33, %v142_v34  ;;  %v147_v53 = vunpack.c.1.s8 %v123_v47  ;;  %vm108_vm13 = vnez %v82_v51  ;;  %v148_v55 = vunpack.c.0.s8 %v123_v47 }
  0x10   :  { %vm183_vm9 = vcmp.ne.s16.totalorder %v137_v38, 0  ;;  %vm184_vm10 = vcmp.ne.s16.totalorder %v140_v39, 0  ;;  %v146_v46 = vpack.c.b16 %v144_v40, %v145_v41  ;;  %v124_v58 = vsel %vm108_vm13, 16843009, %v383_v2 }
  0x11   :  { %v199_v48 = vsel %vm183_vm9, %v27_v36, 0  ;;  %v200_v49 = vsel %vm184_vm10, %v28_v37, 0  ;;  %vm185_vm11 = vcmp.ne.s16.totalorder %v143_v42, 0  ;;  %v149_v61 = vpack.c.b16 %v147_v53, %v148_v55  ;;  %v33_v36 = vld [vmem:[%s519_s1 + $0x18] sm:$0xf] }
  0x12   :  { %v339_v52 = vcombine.low %v199_v48, %v200_v49  ;;  %vm186_vm12 = vcmp.ne.s16.totalorder %v146_v46, 0  ;;  %v201_v54 = vsel %vm185_vm11, %v29_v45, 0  ;;  %v150_v62 = vunpack.c.1.s8 %v124_v58  ;;  %v34_v37 = vld [vmem:[%s519_s1 + $0x1c] sm:$0xf] }
  0x13   :  { %v202_v57 = vsel %vm186_vm12, %v30_v50, 0  ;;  %v151_v63 = vunpack.c.0.s8 %v124_v58  ;;  %vm109_vm14 = vnez %v84_v56  ;;  %v86_v1 = vpack.c.b8 %v85_v59, %v85_v59  ;;  %v35_v58 = vld [vmem:[%s519_s1 + $0x20] sm:$0xf]  ;;  %v36_v59 = vld [vmem:[%s519_s1 + $0x24] sm:$0xf] }
  0x14   :  { %358 = vmatpush3.bf16.xpose.msra.mxu0 %v339_v52  ;;  %v125_v3 = vsel %vm109_vm14, 16843009, %v383_v2  ;;  %v64_v4 = vunpack.c.1.s8 %v423_v15  ;;  %v87_v5 = vpack.c.b16 %v63_v60, %v63_v60  ;;  %v340_v6 = vcombine.low %v201_v54, %v202_v57 }
  0x15   :  { %359 = vmatprep.subr.bf16.mxu0 %v381_v0  ;;  %v152_v7 = vpack.c.b16 %v150_v62, %v151_v63  ;;  %vm187_vm15 = vcmp.ne.s16.totalorder %v149_v61, 0  ;;  %vm110_vm0 = vnez %v86_v1  ;;  %v153_v11 = vunpack.c.1.s8 %v125_v3 }
  0x16   :  { %v88_v8 = vpack.c.b8 %v87_v5, %v87_v5  ;;  %v89_v9 = vpack.c.b16 %v64_v4, %v64_v4  ;;  %v126_v10 = vsel %vm110_vm0, 16843009, %v383_v2  ;;  %v154_v12 = vunpack.c.0.s8 %v125_v3 }
  0x17   :  { %v65_v13 = vunpack.c.2.s8 %v423_v15  ;;  %vm188_vm1 = vcmp.ne.s16.totalorder %v152_v7, 0  ;;  %v156_v18 = vunpack.c.1.s8 %v126_v10  ;;  %v157_v19 = vunpack.c.0.s8 %v126_v10  ;;  %v38_v10 = vld [vmem:[%s519_s1 + $0x2c] sm:$0xf] }
  0x18   :  { %v90_v20 = vpack.c.b8 %v89_v9, %v89_v9  ;;  %vm111_vm2 = vnez %v88_v8  ;;  %v66_v21 = vunpack.c.3.s8 %v423_v15  ;;  %vm50_vm4 = vnez %v46_v14  ;;  %v37_v9 = vld [vmem:[%s519_s1 + $0x28] sm:$0xf] }
  0x19   :  { %v203_v22 = vsel %vm187_vm15, %v31_v16, 0  ;;  %v204_v23 = vsel %vm188_vm1, %v32_v17, 0  ;;  %v155_v24 = vpack.c.b16 %v153_v11, %v154_v12  ;;  %v91_v25 = vpack.c.b16 %v65_v13, %v65_v13 }
  0x1a   :  { %vm112_vm3 = vnez %v90_v20  ;;  %v158_v26 = vpack.c.b16 %v156_v18, %v157_v19  ;;  %v127_v27 = vsel %vm111_vm2, 16843009, %v383_v2  ;;  %v93_v28 = vpack.c.b16 %v66_v21, %v66_v21 }
  0x1b   :  { %v128_v29 = vsel %vm112_vm3, 16843009, %v383_v2  ;;  %v92_v30 = vpack.c.b8 %v91_v25, %v91_v25  ;;  %v54_v31 = vsel %vm50_vm4, 16843009, %v383_v2  ;;  %v341_v15 = vcombine.low %v203_v22, %v204_v23  ;;  %v39_v25 = vld [vmem:[%s519_s1 + $0x30] sm:$0xf] }
  0x1c   :  { %360 = vmatpush3.bf16.xpose.msra.mxu0 %v340_v6  ;;  %v94_v32 = vpack.c.b8 %v93_v28, %v93_v28  ;;  %v67_v33 = vunpack.c.0.s8 %v54_v31  ;;  %vm189_vm5 = vcmp.ne.s16.totalorder %v155_v24, 0  ;;  %v159_v34 = vunpack.c.1.s8 %v127_v27 }
  0x1d   :  { %361 = vmatprep.subr.bf16.mxu0 %v381_v0  ;;  %v68_v35 = vunpack.c.1.s8 %v54_v31  ;;  %vm190_vm6 = vcmp.ne.s16.totalorder %v158_v26, 0  ;;  %v160_v38 = vunpack.c.0.s8 %v127_v27  ;;  %v162_v39 = vunpack.c.1.s8 %v128_v29  ;;  %v40_v26 = vld [vmem:[%s519_s1 + $0x34] sm:$0xf] }
  0x1e   :  { %v163_v40 = vunpack.c.0.s8 %v128_v29  ;;  %vm113_vm7 = vnez %v92_v30  ;;  %vm114_vm8 = vnez %v94_v32  ;;  %v95_v41 = vpack.c.b16 %v67_v33, %v67_v33  ;;  %v41_v32 = vld [vmem:[%s519_s1 + $0x38] sm:$0xf]  ;;  %v42_v33 = vld [vmem:[%s519_s1 + $0x3c] sm:$0xf] }
  0x1f   :  { %v205_v42 = vsel %vm189_vm5, %v33_v36, 0  ;;  %v206_v43 = vsel %vm190_vm6, %v34_v37, 0  ;;  %v97_v44 = vpack.c.b16 %v68_v35, %v68_v35  ;;  %v161_v45 = vpack.c.b16 %v159_v34, %v160_v38  ;;  %v380_v37 = vld [vmem:[%s518_s0] sm:$0xff]  }
  0x20   :  { %v164_v46 = vpack.c.b16 %v162_v39, %v163_v40  ;;  %v129_v47 = vsel %vm113_vm7, 16843009, %v383_v2  ;;  %v130_v48 = vsel %vm114_vm8, 16843009, %v383_v2  ;;  %v69_v49 = vunpack.c.2.s8 %v54_v31  ;;  %v347_v38 = vld [vmem:[%s520_s3] ss:$0 sm:$0xff] }
  0x21   :  { %v342_v50 = vcombine.low %v205_v42, %v206_v43  ;;  %v96_v51 = vpack.c.b8 %v95_v41, %v95_v41  ;;  %v98_v52 = vpack.c.b8 %v97_v44, %v97_v44  ;;  %v70_v53 = vunpack.c.3.s8 %v54_v31 }
  0x22   :  { %v165_v54 = vunpack.c.1.s8 %v129_v47  ;;  %v166_v55 = vunpack.c.0.s8 %v129_v47  ;;  %v168_v56 = vunpack.c.1.s8 %v130_v48  ;;  %v169_v57 = vunpack.c.0.s8 %v130_v48 }
  0x23   :  { %vm191_vm9 = vcmp.ne.s16.totalorder %v161_v45, 0  ;;  %vm192_vm10 = vcmp.ne.s16.totalorder %v164_v46, 0  ;;  %v99_v60 = vpack.c.b16 %v69_v49, %v69_v49  ;;  %vm115_vm11 = vnez %v96_v51 }
  0x24   :  { %362 = vmatpush3.bf16.xpose.msra.mxu0 %v341_v15  ;;  %vm116_vm12 = vnez %v98_v52  ;;  %v101_v61 = vpack.c.b16 %v70_v53, %v70_v53  ;;  %v207_v62 = vsel %vm191_vm9, %v35_v58, 0  ;;  %v208_v63 = vsel %vm192_vm10, %v36_v59, 0 }
  0x25   :  { %363 = vmatprep.subr.bf16.mxu0 %v381_v0  ;;  %v167_v1 = vpack.c.b16 %v165_v54, %v166_v55  ;;  %v170_v3 = vpack.c.b16 %v168_v56, %v169_v57  ;;  %v131_v4 = vsel %vm115_vm11, 16843009, %v383_v2  ;;  %v132_v5 = vsel %vm116_vm12, 16843009, %v383_v2 }
  0x26   :  { %v100_v6 = vpack.c.b8 %v99_v60, %v99_v60  ;;  %v343_v7 = vcombine.low %v207_v62, %v208_v63  ;;  %v102_v8 = vpack.c.b8 %v101_v61, %v101_v61  ;;  %v171_v11 = vunpack.c.1.s8 %v131_v4 }
  0x27   :  { %vm193_vm13 = vcmp.ne.s16.totalorder %v167_v1, 0  ;;  %vm194_vm14 = vcmp.ne.s16.totalorder %v170_v3, 0  ;;  %v172_v12 = vunpack.c.0.s8 %v131_v4  ;;  %v174_v13 = vunpack.c.1.s8 %v132_v5 }
  0x28   :  { %v175_v14 = vunpack.c.0.s8 %v132_v5  ;;  %vm117_vm15 = vnez %v100_v6  ;;  %vm118_vm0 = vnez %v102_v8  ;;  %v209_v16 = vsel %vm193_vm13, %v37_v9, 0 }
  0x29   :  { %v210_v17 = vsel %vm194_vm14, %v38_v10, 0  ;;  %v173_v18 = vpack.c.b16 %v171_v11, %v172_v12  ;;  %v133_v20 = vsel %vm117_vm15, 16843009, %v383_v2  ;;  %v134_v21 = vsel %vm118_vm0, 16843009, %v383_v2 }
  0x2a   :  { %v176_v19 = vpack.c.b16 %v174_v13, %v175_v14  ;;  %v344_v22 = vcombine.low %v209_v16, %v210_v17  ;;  %v177_v23 = vunpack.c.1.s8 %v133_v20  ;;  %v178_v24 = vunpack.c.0.s8 %v133_v20 }
  0x2b   :  { %vm195_vm1 = vcmp.ne.s16.totalorder %v173_v18, 0  ;;  %v180_v27 = vunpack.c.1.s8 %v134_v21  ;;  %v181_v28 = vunpack.c.0.s8 %v134_v21 }
  0x2c   :  { %364 = vmatpush3.bf16.xpose.msra.mxu0 %v342_v50  ;;  %vm196_vm2 = vcmp.ne.s16.totalorder %v176_v19, 0  ;;  %v211_v29 = vsel %vm195_vm1, %v39_v25, 0  ;;  %v179_v30 = vpack.c.b16 %v177_v23, %v178_v24 }
  0x2d   :  { %365 = vmatprep.subr.bf16.mxu0 %v381_v0  ;;  %v212_v2 = vsel %vm196_vm2, %v40_v26, 0  ;;  %v182_v31 = vpack.c.b16 %v180_v27, %v181_v28 }
  0x2e   :  { %v345_v15 = vcombine.low %v211_v29, %v212_v2  ;;  %vm197_vm3 = vcmp.ne.s16.totalorder %v179_v30, 0 }
  0x2f   :  { %vm198_vm4 = vcmp.ne.s16.totalorder %v182_v31, 0  ;;  %v213_v34 = vsel %vm197_vm3, %v41_v32, 0 }
  0x30   :  { %v214_v35 = vsel %vm198_vm4, %v42_v33, 0 }
  0x31   :  { %v346_v36 = vcombine.low %v213_v34, %v214_v35 }
  0x34   :  { %366 = vmatpush3.bf16.xpose.msra.mxu0 %v343_v7 }
  0x35   :  { %367 = vmatprep.subr.bf16.mxu0 %v381_v0 }
  0x3c   :  { %368 = vmatpush3.bf16.xpose.msra.mxu0 %v344_v22 }
  0x3d   :  { %369 = vmatprep.subr.bf16.mxu0 %v381_v0 }
  0x44   :  { %370 = vmatpush3.bf16.xpose.msra.mxu0 %v345_v15 }
  0x45   :  { %371 = vmatprep.subr.bf16.mxu0 %v381_v0 }
  0x4c   :  { %372 = vmatpush3.bf16.xpose.msra.mxu0 %v346_v36 }
  0x53   :  { %374 = vmatmul.mubr.bf16.vlgmr.msra.gmra.mrb[0].mxu0 %v380_v37 }
 0x126   :  { %v307_v39 = vpop.f32.mrb[0].mxu0 }
 0x127   :  { %v330_v40 = vadd.f32 %v347_v38, %v307_v39  ;;  %v375_v41 = vpop.f32.mrb[1].mxu0 }
 0x128   :  { %v310_v42 = vpop.f32.mrb[2].mxu0 }
 0x129   :  { %332 = vst [vmem:[%s521_s4] sm:$0xff] %v330_v40  ;;  %v331_v0 = vadd.f32 %v347_v38, %v310_v42  ;;  %v376_v43 = vpop.f32.mrb[3].mxu0 }
 0x12b   :  { %333 = vst [vmem:[%s521_s4 + $0x8] sm:$0xff] %v331_v0 }

</bundles_post_ra>
